<compile_context>
chip_gen: v6e
topology: v6e:2x2x1
jax: 0.10.0
libtpu: 0.0.40
codegen_flags: <defaults>
</compile_context>

<pallas_src>
import functools

import jax
import jax.numpy as jnp
from jax.experimental import pallas as pl
from jax.experimental.pallas import tpu as pltpu

LANES = 128  # padded lane width of every hidden layer / the weight slab


def _round_up(x, m):
    return ((x + m - 1) // m) * m


def dqn_kernel(x_ref, slab_ref, out_ref, *, state_size, action_size,
               w_offs, b_off):
    """Fused relu(fc1..fc5) + fc6 on one batch tile.

    x_ref    : (TB, state_size)   streamed batch tile
    slab_ref : (R, 128)           packed weights (lane/row padded) + biases,
                                  VMEM-resident across the whole grid
    out_ref  : (TB, action_size)  narrow output tile
    """
    h = x_ref[...]
    # fc1: (TB, S) @ (S, 128); padded output lanes are exact zeros.
    h = jnp.dot(h, slab_ref[w_offs[0]:w_offs[0] + state_size, :],
                preferred_element_type=jnp.float32)
    h = jnp.maximum(h + slab_ref[b_off:b_off + 1, :], 0.0)
    # fc2..fc5: (TB, 128) @ (128, 128); padded rows/cols are exact zeros.
    for i in range(1, 5):
        o = w_offs[i]
        h = jnp.dot(h, slab_ref[o:o + LANES, :],
                    preferred_element_type=jnp.float32)
        h = jnp.maximum(h + slab_ref[b_off + i:b_off + i + 1, :], 0.0)
    # fc6: no ReLU; only the first action_size lanes are meaningful.
    o = w_offs[5]
    y = jnp.dot(h, slab_ref[o:o + LANES, :],
                preferred_element_type=jnp.float32)
    y = y + slab_ref[b_off + 5:b_off + 6, :]
    out_ref[...] = y[:, :action_size].astype(out_ref.dtype)


def _pack_slab(params, state_size):
    """Pack all 6 weights + 6 biases into one zero-padded (R, 128) f32 slab."""
    r0 = _round_up(max(state_size, 8), 8)           # rows reserved for fc1 weight
    w_offs = (0, r0, r0 + LANES, r0 + 2 * LANES, r0 + 3 * LANES, r0 + 4 * LANES)
    b_off = r0 + 5 * LANES                           # 8 bias rows at the end
    slab = jnp.zeros((b_off + 8, LANES), jnp.float32)
    for i, (w, b) in enumerate(params):
        fi, fo = int(w.shape[0]), int(w.shape[1])
        slab = slab.at[w_offs[i]:w_offs[i] + fi, :fo].set(w.astype(jnp.float32))
        slab = slab.at[b_off + i, :fo].set(b.astype(jnp.float32))
    return slab, w_offs, b_off


def dqn_forward(x, params, *, batch_tile=4096):
    """x: (B, state_size) float32. params: list of 6 (W, b), W shaped (in, out)."""
    B, state_size = x.shape
    action_size = int(params[-1][0].shape[1])
    assert action_size <= LANES, "action_size must be <= 128"
    assert all(int(w.shape[1]) <= LANES for w, _ in params), "hidden width > 128"
    assert all(int(w.shape[0]) <= LANES for w, _ in params[1:]), "hidden width > 128"

    slab, w_offs, b_off = _pack_slab(params, state_size)

    # ---- batch-tile selection -------------------------------------------
    batch_tile = max(128, (int(batch_tile) // 128) * 128)   # multiple of 128
    if B > batch_tile:
        TB = batch_tile
    elif B >= 512:
        # Split into >=2 grid steps so both TensorCores get work on v7x.
        TB = max(128, _round_up(-(-B // 2), 128))
    else:
        TB = B  # single tile: lowest latency for small batches

    # Pad the batch so every grid step gets a full tile (avoids partial-tile
    # edge cases; padded rows are zeros and are sliced off at the end).
    Bp = _round_up(B, TB)
    x_p = x if Bp == B else jnp.pad(x, ((0, Bp - B), (0, 0)))
    grid = (Bp // TB,)

    flops = 2 * B * sum(int(w.shape[0]) * int(w.shape[1]) for w, _ in params)
    bytes_accessed = B * (state_size + action_size) * 4 + int(slab.size) * 4

    kernel = functools.partial(dqn_kernel, state_size=state_size,
                               action_size=action_size,
                               w_offs=w_offs, b_off=b_off)

    out = pl.pallas_call(
        kernel,
        out_shape=jax.ShapeDtypeStruct((Bp, action_size), jnp.float32),
        grid=grid,
        in_specs=[
            pl.BlockSpec((TB, state_size), lambda i: (i, 0)),   # streamed x tile
            pl.BlockSpec(slab.shape, lambda i: (0, 0)),          # resident slab
        ],
        out_specs=pl.BlockSpec((TB, action_size), lambda i: (i, 0)),
        compiler_params=pltpu.CompilerParams(
            dimension_semantics=("parallel",),
            vmem_limit_bytes=32 * 1024 * 1024,
        ),
        cost_estimate=pl.CostEstimate(flops=flops, transcendentals=0,
                                      bytes_accessed=bytes_accessed),
    )(x_p, slab)

    return out if Bp == B else out[:B]


def init_params(key, state_size, action_size, hidden_size=64):
    """Deterministic init mimicking nn.Linear default: U(-1/sqrt(fan_in), ...)."""
    dims = [state_size, hidden_size, hidden_size, hidden_size // 2,
            hidden_size // 4, hidden_size // 8, action_size]
    params = []
    for i in range(6):
        fan_in, fan_out = dims[i], dims[i + 1]
        key, kw, kb = jax.random.split(key, 3)
        bound = 1.0 / jnp.sqrt(jnp.float32(fan_in))
        w = jax.random.uniform(kw, (fan_in, fan_out), jnp.float32, -bound, bound)
        b = jax.random.uniform(kb, (fan_out,), jnp.float32, -bound, bound)
        params.append((w, b))
    return params


def reference_forward(x, params):
    h = x
    for i, (w, b) in enumerate(params):
        h = h @ w + b
        if i < 5:
            h = jnp.maximum(h, 0.0)
    return h


if __name__ == "__main__":
    key = jax.random.PRNGKey(0)
    state_size, action_size, hidden_size = 16, 4, 64

    kp, k1, k2, k3 = jax.random.split(key, 4)
    params = init_params(kp, state_size, action_size, hidden_size)

    # Small batch: single tile, single grid step.
    x1 = jax.random.normal(k1, (8, state_size), jnp.float32)
    o1 = jax.block_until_ready(dqn_forward(x1, params))
    assert o1.shape == (8, action_size)
    assert jnp.allclose(o1, reference_forward(x1, params), atol=1e-4, rtol=1e-4), \
        "mismatch vs reference (B=8)"

    # Batch large enough to split into 2 parallel grid steps (megacore path).
    x2 = jax.random.normal(k2, (512, state_size), jnp.float32)
    o2 = jax.block_until_ready(dqn_forward(x2, params))
    assert o2.shape == (512, action_size)
    assert jnp.allclose(o2, reference_forward(x2, params), atol=1e-4, rtol=1e-4), \
        "mismatch vs reference (B=512)"

    # Ragged batch exercising the batch-padding path + multi-tile grid.
    x3 = jax.random.normal(k3, (300, state_size), jnp.float32)
    o3 = jax.block_until_ready(dqn_forward(x3, params, batch_tile=128))
    assert o3.shape == (300, action_size)
    assert jnp.allclose(o3, reference_forward(x3, params), atol=1e-4, rtol=1e-4), \
        "mismatch vs reference (B=300, ragged)"

    print("KERNEL_OK")
</pallas_src>

<mosaic_0001>
module attributes {stable_mosaic.version = 11 : i64} {
  func.func @dqn_kernel(%arg0: i32, %arg1: memref<8x16xf32, #tpu.memory_space<vmem>>, %arg2: memref<664x128xf32, #tpu.memory_space<vmem>>, %arg3: memref<8x4xf32, #tpu.memory_space<vmem>>) attributes {dimension_semantics = [#tpu.dimension_semantics<parallel>], iteration_bounds = array<i64: 1>, scalar_prefetch = 0 : i64, scratch_operands = 0 : i64, tpu.core_type = #tpu.core_type<tc>, window_params = [{transform_indices = @transform_0, window_bounds = array<i64: 8, 16>}, {pipeline_mode = #tpu.pipeline_mode<synchronous>, transform_indices = @transform_1, window_bounds = array<i64: 664, 128>}, {transform_indices = @transform_2, window_bounds = array<i64: 8, 4>}]} {
    %c0 = arith.constant 0 : index
    %c0_0 = arith.constant 0 : index
    %0 = vector.load %arg1[%c0, %c0_0] : memref<8x16xf32, #tpu.memory_space<vmem>>, vector<8x16xf32>
    %c0_1 = arith.constant 0 : index
    %c0_2 = arith.constant 0 : index
    %1 = vector.load %arg2[%c0_1, %c0_2] : memref<664x128xf32, #tpu.memory_space<vmem>>, vector<16x128xf32>
    %cst = arith.constant dense<0.000000e+00> : vector<8x128xf32>
    %2 = tpu.matmul %0, %1, %cst {dimension_numbers = #tpu.dot_dimension_numbers<[1], [0], [0], [1], [0, 0, 1, 1], [], []>} : vector<8x16xf32>, vector<16x128xf32>, vector<8x128xf32> -> vector<8x128xf32>
    %c656 = arith.constant 656 : index
    %c0_3 = arith.constant 0 : index
    %3 = vector.load %arg2[%c656, %c0_3] : memref<664x128xf32, #tpu.memory_space<vmem>>, vector<1x128xf32>
    %4 = vector.broadcast %3 : vector<1x128xf32> to vector<8x128xf32>
    %5 = arith.addf %2, %4 : vector<8x128xf32>
    %cst_4 = arith.constant 0.000000e+00 : f32
    %6 = vector.broadcast %cst_4 : f32 to vector<8x128xf32>
    %7 = arith.maximumf %5, %6 : vector<8x128xf32>
    %c16 = arith.constant 16 : index
    %c0_5 = arith.constant 0 : index
    %8 = vector.load %arg2[%c16, %c0_5] : memref<664x128xf32, #tpu.memory_space<vmem>>, vector<128x128xf32>
    %cst_6 = arith.constant dense<0.000000e+00> : vector<8x128xf32>
    %9 = tpu.matmul %7, %8, %cst_6 {dimension_numbers = #tpu.dot_dimension_numbers<[1], [0], [0], [1], [0, 0, 1, 1], [], []>} : vector<8x128xf32>, vector<128x128xf32>, vector<8x128xf32> -> vector<8x128xf32>
    %c657 = arith.constant 657 : index
    %c0_7 = arith.constant 0 : index
    %10 = vector.load %arg2[%c657, %c0_7] : memref<664x128xf32, #tpu.memory_space<vmem>>, vector<1x128xf32>
    %11 = vector.broadcast %10 : vector<1x128xf32> to vector<8x128xf32>
    %12 = arith.addf %9, %11 : vector<8x128xf32>
    %cst_8 = arith.constant 0.000000e+00 : f32
    %13 = vector.broadcast %cst_8 : f32 to vector<8x128xf32>
    %14 = arith.maximumf %12, %13 : vector<8x128xf32>
    %c144 = arith.constant 144 : index
    %c0_9 = arith.constant 0 : index
    %15 = vector.load %arg2[%c144, %c0_9] : memref<664x128xf32, #tpu.memory_space<vmem>>, vector<128x128xf32>
    %cst_10 = arith.constant dense<0.000000e+00> : vector<8x128xf32>
    %16 = tpu.matmul %14, %15, %cst_10 {dimension_numbers = #tpu.dot_dimension_numbers<[1], [0], [0], [1], [0, 0, 1, 1], [], []>} : vector<8x128xf32>, vector<128x128xf32>, vector<8x128xf32> -> vector<8x128xf32>
    %c658 = arith.constant 658 : index
    %c0_11 = arith.constant 0 : index
    %17 = vector.load %arg2[%c658, %c0_11] : memref<664x128xf32, #tpu.memory_space<vmem>>, vector<1x128xf32>
    %18 = vector.broadcast %17 : vector<1x128xf32> to vector<8x128xf32>
    %19 = arith.addf %16, %18 : vector<8x128xf32>
    %cst_12 = arith.constant 0.000000e+00 : f32
    %20 = vector.broadcast %cst_12 : f32 to vector<8x128xf32>
    %21 = arith.maximumf %19, %20 : vector<8x128xf32>
    %c272 = arith.constant 272 : index
    %c0_13 = arith.constant 0 : index
    %22 = vector.load %arg2[%c272, %c0_13] : memref<664x128xf32, #tpu.memory_space<vmem>>, vector<128x128xf32>
    %cst_14 = arith.constant dense<0.000000e+00> : vector<8x128xf32>
    %23 = tpu.matmul %21, %22, %cst_14 {dimension_numbers = #tpu.dot_dimension_numbers<[1], [0], [0], [1], [0, 0, 1, 1], [], []>} : vector<8x128xf32>, vector<128x128xf32>, vector<8x128xf32> -> vector<8x128xf32>
    %c659 = arith.constant 659 : index
    %c0_15 = arith.constant 0 : index
    %24 = vector.load %arg2[%c659, %c0_15] : memref<664x128xf32, #tpu.memory_space<vmem>>, vector<1x128xf32>
    %25 = vector.broadcast %24 : vector<1x128xf32> to vector<8x128xf32>
    %26 = arith.addf %23, %25 : vector<8x128xf32>
    %cst_16 = arith.constant 0.000000e+00 : f32
    %27 = vector.broadcast %cst_16 : f32 to vector<8x128xf32>
    %28 = arith.maximumf %26, %27 : vector<8x128xf32>
    %c400 = arith.constant 400 : index
    %c0_17 = arith.constant 0 : index
    %29 = vector.load %arg2[%c400, %c0_17] : memref<664x128xf32, #tpu.memory_space<vmem>>, vector<128x128xf32>
    %cst_18 = arith.constant dense<0.000000e+00> : vector<8x128xf32>
    %30 = tpu.matmul %28, %29, %cst_18 {dimension_numbers = #tpu.dot_dimension_numbers<[1], [0], [0], [1], [0, 0, 1, 1], [], []>} : vector<8x128xf32>, vector<128x128xf32>, vector<8x128xf32> -> vector<8x128xf32>
    %c660 = arith.constant 660 : index
    %c0_19 = arith.constant 0 : index
    %31 = vector.load %arg2[%c660, %c0_19] : memref<664x128xf32, #tpu.memory_space<vmem>>, vector<1x128xf32>
    %32 = vector.broadcast %31 : vector<1x128xf32> to vector<8x128xf32>
    %33 = arith.addf %30, %32 : vector<8x128xf32>
    %cst_20 = arith.constant 0.000000e+00 : f32
    %34 = vector.broadcast %cst_20 : f32 to vector<8x128xf32>
    %35 = arith.maximumf %33, %34 : vector<8x128xf32>
    %c528 = arith.constant 528 : index
    %c0_21 = arith.constant 0 : index
    %36 = vector.load %arg2[%c528, %c0_21] : memref<664x128xf32, #tpu.memory_space<vmem>>, vector<128x128xf32>
    %cst_22 = arith.constant dense<0.000000e+00> : vector<8x128xf32>
    %37 = tpu.matmul %35, %36, %cst_22 {dimension_numbers = #tpu.dot_dimension_numbers<[1], [0], [0], [1], [0, 0, 1, 1], [], []>} : vector<8x128xf32>, vector<128x128xf32>, vector<8x128xf32> -> vector<8x128xf32>
    %c661 = arith.constant 661 : index
    %c0_23 = arith.constant 0 : index
    %38 = vector.load %arg2[%c661, %c0_23] : memref<664x128xf32, #tpu.memory_space<vmem>>, vector<1x128xf32>
    %39 = vector.broadcast %38 : vector<1x128xf32> to vector<8x128xf32>
    %40 = arith.addf %37, %39 : vector<8x128xf32>
    %41 = vector.extract_strided_slice %40 {offsets = [0, 0], sizes = [8, 4], strides = [1, 1]} : vector<8x128xf32> to vector<8x4xf32>
    %c0_24 = arith.constant 0 : index
    %c0_25 = arith.constant 0 : index
    %42 = vector.load %arg3[%c0_24, %c0_25] : memref<8x4xf32, #tpu.memory_space<vmem>>, vector<8x4xf32>
    tpu.vector_store %arg3[%c0_24, %c0_25], %41 {strides = array<i32>} : memref<8x4xf32, #tpu.memory_space<vmem>>, vector<8x4xf32>,
    return
  }
  func.func @transform_0(%arg0: i32) -> (i32, i32) {
    %c0_i32 = arith.constant 0 : i32
    %c0_i32_0 = arith.constant 0 : i32
    return %arg0, %c0_i32 : i32, i32
  }
  func.func @transform_1(%arg0: i32) -> (i32, i32) {
    %c0_i32 = arith.constant 0 : i32
    %c0_i32_0 = arith.constant 0 : i32
    %c0_i32_1 = arith.constant 0 : i32
    return %c0_i32, %c0_i32_0 : i32, i32
  }
  func.func @transform_2(%arg0: i32) -> (i32, i32) {
    %c0_i32 = arith.constant 0 : i32
    %c0_i32_0 = arith.constant 0 : i32
    return %arg0, %c0_i32 : i32, i32
  }
}

</mosaic_0001>

<bundles_post_ra>
// kernel: tpu_custom_call.1
= control target key start
LH: loop header
LB: loop body
LE: loop exit
PB: predicated region body
PF: predicated region fallthrough
CT: control target
= control target key end

     0   :  { %7 = vsyncpa [#allocation3], 0  ;;  %s1038_s0 = inlined_call_operand.hbm [shape: f32[8,16], index: 0, kind: input, shape index: {}]   ;;  %s1039_s1 = inlined_call_operand.hbm [shape: f32[664,128], index: 1, kind: input, shape index: {}]   ;;  %s1040_s2 = inlined_call_operand.vmem [shape: f32[8,4], index: 2, kind: output, shape index: {}]  }
   0x1   :  { %8 = vsyncpa [#allocation5], 0  ;;  %s914_s9 = smov [#allocation2]   ;;  %s915_s11 = smov [#allocation4]  }
   0x2   :  { %s15_s10 = sshll.u32 %s914_s9, 4  ;;  %s24_s12 = sshll.u32 %s915_s11, 4  ;;  %s16_s10 = int_to_ptr.vmem [resolvable:$true] %s15_s10  ;;  %s25_s12 = int_to_ptr.vmem [resolvable:$true] %s24_s12 }
   0x3   :  { %s878_s13 = scalar_lea.vmem %s16_s10, 128  ;;  %p883_p1 = scmp.lt.s32.totalorder %s16_s10, %s16_s10 }
   0x4   :  { %p879_p0 = scmp.ne.s32.totalorder %s16_s10, %s878_s13  ;;  %p884_p2 = scmp.lt.s32.totalorder %s878_s13, %s878_s13 }
   0x6   :  { %p885_p3 = por %p884_p2, %p883_p1 }
   0x8   :  { %p886_p4 = pnand %p885_p3, %p879_p0 }
   0xa   :  { %889 = shalt.err (!%p886_p4)
}
   0xb   :  { %18 = dma.hbm_to_vmem [thread:$0]  %s1038_s0, 128, %s16_s10, [#allocation3]  }
   0xc   :  { %s898_s16 = scalar_lea.vmem %s25_s12, 10624  ;;  %p903_p6 = scmp.lt.s32.totalorder %s25_s12, %s25_s12 }
   0xd   :  { %p899_p5 = scmp.ne.s32.totalorder %s25_s12, %s898_s16  ;;  %p904_p7 = scmp.lt.s32.totalorder %s898_s16, %s898_s16 }
   0xf   :  { %p905_p8 = por %p904_p7, %p903_p6 }
  0x11   :  { %p906_p9 = pnand %p905_p8, %p899_p5 }
  0x13   :  { %909 = shalt.err (!%p906_p9)
}
  0x14   :  { %s916_s17 = smov 128   ;;  %s917_s18 = smov 8  }
  0x15   :  { %30 = dma.hbm_to_vmem [thread:$0]  %s1039_s1, 10624, %s25_s12, [#allocation5], %s916_s17, %s916_s17, %s917_s18  }
  0x16   :  { %910 = dma.done.wait [#allocation3], 128  }
  0x17   :  { %911 = vsyncadd [#allocation3], 4294967168 }
  0x18   :  { %912 = dma.done.wait [#allocation5], 10624  }
  0x19   :  { %913 = vsyncadd [#allocation5], 4294956672  ;;  %v918_v0 = vmov 0.0   ;;  %vm919_vm0 = vmmov 0   ;;  %v39_v1 = vld [vmem:[#allocation4 + $0x8] sm:$0xff]  ;;  %v38_v2 = vld [vmem:[#allocation4] sm:$0xff] }
  0x1a   :  { %682 = vmatprep.subr.mxu0 %v918_v0  ;;  %686 = vmatprep.mubr.msk.f32.mxu0 %vm919_vm0, %v918_v0  ;;  %v37_v3 = vld [vmem:[#allocation2] sm:$0xff]  ;;  %vm45_vm1 = vcmask 130048   ;;  %v135_v4 = vld [vmem:[#allocation4 + $0x88] sm:$0xff]  ;;  %v134_v5 = vld [vmem:[#allocation4 + $0x80] sm:$0xff]  ;;  %vm579_vm2 = vcmask 31744  }
  0x1b   :  { %689 = vmatprep.subr.mxu1 %v918_v0  ;;  %721 = vmatprep.mubr.msk.f32.mxu1 %vm919_vm0, %v918_v0  ;;  %v133_v6 = vld [vmem:[#allocation4 + $0x78] sm:$0xff]  ;;  %v132_v7 = vld [vmem:[#allocation4 + $0x70] sm:$0xff]  ;;  %v131_v8 = vld [vmem:[#allocation4 + $0x68] sm:$0xff] }
  0x1c   :  { %683 = vmatpush3.msra.mxu0 %v39_v1  ;;  %690 = vmatpush3.msra.mxu1 %v135_v4  ;;  %v130_v9 = vld [vmem:[#allocation4 + $0x60] sm:$0xff]  ;;  %v129_v10 = vld [vmem:[#allocation4 + $0x58] sm:$0xff]  ;;  %v128_v11 = vld [vmem:[#allocation4 + $0x50] sm:$0xff] }
  0x1d   :  { %684 = vmatprep.subr.mxu0 %v918_v0  ;;  %691 = vmatprep.subr.mxu1 %v918_v0  ;;  %v127_v12 = vld [vmem:[#allocation4 + $0x48] sm:$0xff]  ;;  %v126_v13 = vld [vmem:[#allocation4 + $0x40] sm:$0xff]  ;;  %v125_v14 = vld [vmem:[#allocation4 + $0x38] sm:$0xff] }
  0x1e   :  { %685 = vmatpush3.msra.mxu0 %v38_v2  ;;  %692 = vmatpush3.msra.mxu1 %v134_v5  ;;  %v124_v15 = vld [vmem:[#allocation4 + $0x30] sm:$0xff]  ;;  %v123_v16 = vld [vmem:[#allocation4 + $0x28] sm:$0xff]  ;;  %v122_v17 = vld [vmem:[#allocation4 + $0x20] sm:$0xff] }
  0x1f   :  { %687 = vmatmul.mubr.msk.f32.vlgmr.msra.gmra.mxu0 %vm45_vm1, %v37_v3  ;;  %693 = vmatprep.subr.mxu1 %v918_v0  ;;  %v121_v18 = vld [vmem:[#allocation4 + $0x18] sm:$0xff]  ;;  %v120_v19 = vld [vmem:[#allocation4 + $0x10] sm:$0xff]  ;;  %v227_v20 = vld [vmem:[#allocation4 + $0x108] sm:$0xff] }
  0x20   :  { %724 = vmatprep.subr.mxu0 %v918_v0  ;;  %694 = vmatpush3.msra.mxu1 %v133_v6  ;;  %v226_v21 = vld [vmem:[#allocation4 + $0x100] sm:$0xff]  ;;  %v225_v22 = vld [vmem:[#allocation4 + $0xf8] sm:$0xff]  ;;  %v224_v23 = vld [vmem:[#allocation4 + $0xf0] sm:$0xff] }
  0x21   :  { %756 = vmatprep.mubr.msk.f32.mxu0 %vm919_vm0, %v918_v0  ;;  %695 = vmatprep.subr.mxu1 %v918_v0  ;;  %v223_v24 = vld [vmem:[#allocation4 + $0xe8] sm:$0xff]  ;;  %v222_v25 = vld [vmem:[#allocation4 + $0xe0] sm:$0xff]  ;;  %v221_v26 = vld [vmem:[#allocation4 + $0xd8] sm:$0xff] }
  0x22   :  { %696 = vmatpush3.msra.mxu1 %v132_v7  ;;  %725 = vmatpush3.msra.mxu0 %v227_v20  ;;  %v220_v27 = vld [vmem:[#allocation4 + $0xd0] sm:$0xff]  ;;  %v219_v28 = vld [vmem:[#allocation4 + $0xc8] sm:$0xff]  ;;  %v218_v29 = vld [vmem:[#allocation4 + $0xc0] sm:$0xff] }
  0x23   :  { %697 = vmatprep.subr.mxu1 %v918_v0  ;;  %726 = vmatprep.subr.mxu0 %v918_v0  ;;  %v217_v30 = vld [vmem:[#allocation4 + $0xb8] sm:$0xff]  ;;  %v216_v31 = vld [vmem:[#allocation4 + $0xb0] sm:$0xff]  ;;  %v215_v32 = vld [vmem:[#allocation4 + $0xa8] sm:$0xff] }
  0x24   :  { %698 = vmatpush3.msra.mxu1 %v131_v8  ;;  %727 = vmatpush3.msra.mxu0 %v226_v21  ;;  %v587_v33 = vld [vmem:[#allocation4 + $0x290] ss:$0 sm:$0xff]  ;;  %v214_v38 = vld [vmem:[#allocation4 + $0xa0] sm:$0xff]  ;;  %v213_v39 = vld [vmem:[#allocation4 + $0x98] sm:$0xff] }
  0x25   :  { %699 = vmatprep.subr.mxu1 %v918_v0  ;;  %728 = vmatprep.subr.mxu0 %v918_v0  ;;  %v212_v40 = vld [vmem:[#allocation4 + $0x90] sm:$0xff]  ;;  %v319_v41 = vld [vmem:[#allocation4 + $0x188] sm:$0xff]  ;;  %v318_v42 = vld [vmem:[#allocation4 + $0x180] sm:$0xff] }
  0x26   :  { %700 = vmatpush3.msra.mxu1 %v130_v9  ;;  %729 = vmatpush3.msra.mxu0 %v225_v22  ;;  %v317_v43 = vld [vmem:[#allocation4 + $0x178] sm:$0xff]  ;;  %v316_v44 = vld [vmem:[#allocation4 + $0x170] sm:$0xff]  ;;  %v315_v45 = vld [vmem:[#allocation4 + $0x168] sm:$0xff] }
  0x27   :  { %701 = vmatprep.subr.mxu1 %v918_v0  ;;  %730 = vmatprep.subr.mxu0 %v918_v0  ;;  %v314_v46 = vld [vmem:[#allocation4 + $0x160] sm:$0xff]  ;;  %v313_v47 = vld [vmem:[#allocation4 + $0x158] sm:$0xff]  ;;  %v312_v48 = vld [vmem:[#allocation4 + $0x150] sm:$0xff] }
  0x28   :  { %702 = vmatpush3.msra.mxu1 %v129_v10  ;;  %731 = vmatpush3.msra.mxu0 %v224_v23  ;;  %v311_v49 = vld [vmem:[#allocation4 + $0x148] sm:$0xff]  ;;  %v310_v50 = vld [vmem:[#allocation4 + $0x140] sm:$0xff]  ;;  %v309_v51 = vld [vmem:[#allocation4 + $0x138] sm:$0xff] }
  0x29   :  { %703 = vmatprep.subr.mxu1 %v918_v0  ;;  %732 = vmatprep.subr.mxu0 %v918_v0  ;;  %v308_v52 = vld [vmem:[#allocation4 + $0x130] sm:$0xff]  ;;  %v307_v53 = vld [vmem:[#allocation4 + $0x128] sm:$0xff]  ;;  %v306_v59 = vld [vmem:[#allocation4 + $0x120] sm:$0xff] }
  0x2a   :  { %704 = vmatpush3.msra.mxu1 %v128_v11  ;;  %733 = vmatpush3.msra.mxu0 %v223_v24  ;;  %v589_v54 = vld [vmem:[#allocation4 + $0x291] ss:$0 sm:$0xff]  ;;  %v305_v60 = vld [vmem:[#allocation4 + $0x118] sm:$0xff]  ;;  %v411_v62 = vld [vmem:[#allocation4 + $0x208] sm:$0xff] }
  0x2b   :  { %705 = vmatprep.subr.mxu1 %v918_v0  ;;  %734 = vmatprep.subr.mxu0 %v918_v0  ;;  %v304_v61 = vld [vmem:[#allocation4 + $0x110] sm:$0xff]  ;;  %v410_v63 = vld [vmem:[#allocation4 + $0x200] sm:$0xff]  ;;  %v409_v1 = vld [vmem:[#allocation4 + $0x1f8] sm:$0xff] }
  0x2c   :  { %706 = vmatpush3.msra.mxu1 %v127_v12  ;;  %735 = vmatpush3.msra.mxu0 %v222_v25  ;;  %v408_v2 = vld [vmem:[#allocation4 + $0x1f0] sm:$0xff]  ;;  %v407_v3 = vld [vmem:[#allocation4 + $0x1e8] sm:$0xff]  ;;  %v406_v4 = vld [vmem:[#allocation4 + $0x1e0] sm:$0xff] }
  0x2d   :  { %707 = vmatprep.subr.mxu1 %v918_v0  ;;  %736 = vmatprep.subr.mxu0 %v918_v0  ;;  %v405_v5 = vld [vmem:[#allocation4 + $0x1d8] sm:$0xff]  ;;  %v404_v6 = vld [vmem:[#allocation4 + $0x1d0] sm:$0xff]  ;;  %v403_v7 = vld [vmem:[#allocation4 + $0x1c8] sm:$0xff] }
  0x2e   :  { %708 = vmatpush3.msra.mxu1 %v126_v13  ;;  %737 = vmatpush3.msra.mxu0 %v221_v26  ;;  %v402_v8 = vld [vmem:[#allocation4 + $0x1c0] sm:$0xff]  ;;  %v401_v9 = vld [vmem:[#allocation4 + $0x1b8] sm:$0xff]  ;;  %v400_v10 = vld [vmem:[#allocation4 + $0x1b0] sm:$0xff] }
  0x2f   :  { %709 = vmatprep.subr.mxu1 %v918_v0  ;;  %738 = vmatprep.subr.mxu0 %v918_v0  ;;  %v399_v11 = vld [vmem:[#allocation4 + $0x1a8] sm:$0xff]  ;;  %v590_v12 = vld [vmem:[#allocation4 + $0x292] ss:$0 sm:$0xff]  ;;  %v502_v21 = vld [vmem:[#allocation4 + $0x280] sm:$0xff] }
  0x30   :  { %710 = vmatpush3.msra.mxu1 %v125_v14  ;;  %739 = vmatpush3.msra.mxu0 %v220_v27  ;;  %v503_v20 = vld [vmem:[#allocation4 + $0x288] sm:$0xff]  ;;  %v501_v22 = vld [vmem:[#allocation4 + $0x278] sm:$0xff]  ;;  %v500_v23 = vld [vmem:[#allocation4 + $0x270] sm:$0xff] }
  0x31   :  { %711 = vmatprep.subr.mxu1 %v918_v0  ;;  %740 = vmatprep.subr.mxu0 %v918_v0  ;;  %v499_v24 = vld [vmem:[#allocation4 + $0x268] sm:$0xff]  ;;  %v498_v25 = vld [vmem:[#allocation4 + $0x260] sm:$0xff]  ;;  %v497_v26 = vld [vmem:[#allocation4 + $0x258] sm:$0xff] }
  0x32   :  { %712 = vmatpush3.msra.mxu1 %v124_v15  ;;  %741 = vmatpush3.msra.mxu0 %v219_v28  ;;  %v496_v27 = vld [vmem:[#allocation4 + $0x250] sm:$0xff]  ;;  %v495_v28 = vld [vmem:[#allocation4 + $0x248] sm:$0xff] }
  0x33   :  { %713 = vmatprep.subr.mxu1 %v918_v0  ;;  %742 = vmatprep.subr.mxu0 %v918_v0 }
  0x34   :  { %714 = vmatpush3.msra.mxu1 %v123_v16  ;;  %743 = vmatpush3.msra.mxu0 %v218_v29  ;;  %v494_v29 = vld [vmem:[#allocation4 + $0x240] sm:$0xff] }
  0x35   :  { %715 = vmatprep.subr.mxu1 %v918_v0  ;;  %744 = vmatprep.subr.mxu0 %v918_v0 }
  0x36   :  { %716 = vmatpush3.msra.mxu1 %v122_v17  ;;  %745 = vmatpush3.msra.mxu0 %v217_v30  ;;  %v398_v17 = vld [vmem:[#allocation4 + $0x1a0] sm:$0xff]  ;;  %v493_v30 = vld [vmem:[#allocation4 + $0x238] sm:$0xff] }
  0x37   :  { %717 = vmatprep.subr.mxu1 %v918_v0  ;;  %746 = vmatprep.subr.mxu0 %v918_v0 }
  0x38   :  { %718 = vmatpush3.msra.mxu1 %v121_v18  ;;  %747 = vmatpush3.msra.mxu0 %v216_v31  ;;  %v397_v18 = vld [vmem:[#allocation4 + $0x198] sm:$0xff]  ;;  %v492_v31 = vld [vmem:[#allocation4 + $0x230] sm:$0xff] }
  0x39   :  { %719 = vmatprep.subr.mxu1 %v918_v0  ;;  %748 = vmatprep.subr.mxu0 %v918_v0 }
  0x3a   :  { %720 = vmatpush3.msra.mxu1 %v120_v19  ;;  %749 = vmatpush3.msra.mxu0 %v215_v32  ;;  %v396_v19 = vld [vmem:[#allocation4 + $0x190] sm:$0xff]  ;;  %v491_v32 = vld [vmem:[#allocation4 + $0x228] sm:$0xff] }
  0x3b   :  { %759 = vmatprep.subr.mxu1 %v918_v0  ;;  %750 = vmatprep.subr.mxu0 %v918_v0 }
  0x3c   :  { %751 = vmatpush3.msra.mxu0 %v214_v38  ;;  %v490_v38 = vld [vmem:[#allocation4 + $0x220] sm:$0xff] }
  0x3d   :  { %752 = vmatprep.subr.mxu0 %v918_v0 }
  0x3e   :  { %753 = vmatpush3.msra.mxu0 %v213_v39  ;;  %v489_v39 = vld [vmem:[#allocation4 + $0x218] sm:$0xff] }
  0x3f   :  { %754 = vmatprep.subr.mxu0 %v918_v0 }
  0x40   :  { %755 = vmatpush3.msra.mxu0 %v212_v40  ;;  %v488_v40 = vld [vmem:[#allocation4 + $0x210] sm:$0xff] }
  0x41   :  { %794 = vmatprep.subr.mxu0 %v918_v0 }
  0xdf   :  { %v115_v34 = vpop.f32.mrf.mxu0 }
  0xe0   :  { %v116_v35 = vadd.f32 %v587_v33, %v115_v34  ;;  %v591_v33 = vld [vmem:[#allocation4 + $0x293] ss:$0 sm:$0xff] }
  0xe1   :  { %v688_v36 = vpop.f32.mrf.mxu0 }
  0xe2   :  { %v119_v37 = vmax.f32 %v116_v35, 0.0 }
  0xe4   :  { %722 = vmatmul.mubr.f32.vlgmr.msra.gmra.mxu1 %v119_v37 }
  0xe5   :  { %791 = vmatprep.mubr.msk.f32.mxu1 %vm919_vm0, %v918_v0  ;;  %760 = vmatpush3.msra.mxu1 %v319_v41  ;;  %v592_v41 = vld [vmem:[#allocation4 + $0x294] ss:$0 sm:$0xff] }
  0xe6   :  { %761 = vmatprep.subr.mxu1 %v918_v0 }
  0xe7   :  { %762 = vmatpush3.msra.mxu1 %v318_v42 }
  0xe8   :  { %763 = vmatprep.subr.mxu1 %v918_v0 }
  0xe9   :  { %764 = vmatpush3.msra.mxu1 %v317_v43 }
  0xea   :  { %765 = vmatprep.subr.mxu1 %v918_v0 }
  0xeb   :  { %766 = vmatpush3.msra.mxu1 %v316_v44 }
  0xec   :  { %767 = vmatprep.subr.mxu1 %v918_v0 }
  0xed   :  { %768 = vmatpush3.msra.mxu1 %v315_v45 }
  0xee   :  { %769 = vmatprep.subr.mxu1 %v918_v0 }
  0xef   :  { %770 = vmatpush3.msra.mxu1 %v314_v46  ;;  %v593_v46 = vld [vmem:[#allocation4 + $0x295] ss:$0 sm:$0xff] }
  0xf0   :  { %771 = vmatprep.subr.mxu1 %v918_v0 }
  0xf1   :  { %772 = vmatpush3.msra.mxu1 %v313_v47 }
  0xf2   :  { %773 = vmatprep.subr.mxu1 %v918_v0 }
  0xf3   :  { %774 = vmatpush3.msra.mxu1 %v312_v48 }
  0xf4   :  { %775 = vmatprep.subr.mxu1 %v918_v0 }
  0xf5   :  { %776 = vmatpush3.msra.mxu1 %v311_v49 }
  0xf6   :  { %777 = vmatprep.subr.mxu1 %v918_v0 }
  0xf7   :  { %778 = vmatpush3.msra.mxu1 %v310_v50 }
  0xf8   :  { %779 = vmatprep.subr.mxu1 %v918_v0 }
  0xf9   :  { %780 = vmatpush3.msra.mxu1 %v309_v51 }
  0xfa   :  { %781 = vmatprep.subr.mxu1 %v918_v0 }
  0xfb   :  { %782 = vmatpush3.msra.mxu1 %v308_v52 }
  0xfc   :  { %783 = vmatprep.subr.mxu1 %v918_v0 }
  0xfd   :  { %784 = vmatpush3.msra.mxu1 %v307_v53 }
  0xfe   :  { %785 = vmatprep.subr.mxu1 %v918_v0 }
  0xff   :  { %786 = vmatpush3.msra.mxu1 %v306_v59 }
 0x100   :  { %787 = vmatprep.subr.mxu1 %v918_v0 }
 0x101   :  { %788 = vmatpush3.msra.mxu1 %v305_v60 }
 0x102   :  { %789 = vmatprep.subr.mxu1 %v918_v0 }
 0x103   :  { %790 = vmatpush3.msra.mxu1 %v304_v61 }
 0x104   :  { %829 = vmatprep.subr.mxu1 %v918_v0 }
 0x1a4   :  { %v207_v55 = vpop.f32.mrf.mxu1 }
 0x1a5   :  { %v208_v56 = vadd.f32 %v589_v54, %v207_v55 }
 0x1a6   :  { %v723_v57 = vpop.f32.mrf.mxu1 }
 0x1a7   :  { %v211_v58 = vmax.f32 %v208_v56, 0.0 }
 0x1a9   :  { %757 = vmatmul.mubr.f32.vlgmr.msra.gmra.mxu0 %v211_v58 }
 0x1aa   :  { %826 = vmatprep.mubr.msk.f32.mxu0 %vm919_vm0, %v918_v0  ;;  %795 = vmatpush3.msra.mxu0 %v411_v62 }
 0x1ab   :  { %796 = vmatprep.subr.mxu0 %v918_v0 }
 0x1ac   :  { %797 = vmatpush3.msra.mxu0 %v410_v63 }
 0x1ad   :  { %798 = vmatprep.subr.mxu0 %v918_v0 }
 0x1ae   :  { %799 = vmatpush3.msra.mxu0 %v409_v1 }
 0x1af   :  { %800 = vmatprep.subr.mxu0 %v918_v0 }
 0x1b0   :  { %801 = vmatpush3.msra.mxu0 %v408_v2 }
 0x1b1   :  { %802 = vmatprep.subr.mxu0 %v918_v0 }
 0x1b2   :  { %803 = vmatpush3.msra.mxu0 %v407_v3 }
 0x1b3   :  { %804 = vmatprep.subr.mxu0 %v918_v0 }
 0x1b4   :  { %805 = vmatpush3.msra.mxu0 %v406_v4 }
 0x1b5   :  { %806 = vmatprep.subr.mxu0 %v918_v0 }
 0x1b6   :  { %807 = vmatpush3.msra.mxu0 %v405_v5 }
 0x1b7   :  { %808 = vmatprep.subr.mxu0 %v918_v0 }
 0x1b8   :  { %809 = vmatpush3.msra.mxu0 %v404_v6 }
 0x1b9   :  { %810 = vmatprep.subr.mxu0 %v918_v0 }
 0x1ba   :  { %811 = vmatpush3.msra.mxu0 %v403_v7 }
 0x1bb   :  { %812 = vmatprep.subr.mxu0 %v918_v0 }
 0x1bc   :  { %813 = vmatpush3.msra.mxu0 %v402_v8 }
 0x1bd   :  { %814 = vmatprep.subr.mxu0 %v918_v0 }
 0x1be   :  { %815 = vmatpush3.msra.mxu0 %v401_v9 }
 0x1bf   :  { %816 = vmatprep.subr.mxu0 %v918_v0 }
 0x1c0   :  { %817 = vmatpush3.msra.mxu0 %v400_v10 }
 0x1c1   :  { %818 = vmatprep.subr.mxu0 %v918_v0 }
 0x1c2   :  { %819 = vmatpush3.msra.mxu0 %v399_v11 }
 0x1c3   :  { %820 = vmatprep.subr.mxu0 %v918_v0 }
 0x1c4   :  { %821 = vmatpush3.msra.mxu0 %v398_v17 }
 0x1c5   :  { %822 = vmatprep.subr.mxu0 %v918_v0 }
 0x1c6   :  { %823 = vmatpush3.msra.mxu0 %v397_v18 }
 0x1c7   :  { %824 = vmatprep.subr.mxu0 %v918_v0 }
 0x1c8   :  { %825 = vmatpush3.msra.mxu0 %v396_v19 }
 0x269   :  { %v299_v13 = vpop.f32.mrf.mxu0 }
 0x26a   :  { %v300_v14 = vadd.f32 %v590_v12, %v299_v13 }
 0x26b   :  { %v758_v15 = vpop.f32.mrf.mxu0 }
 0x26c   :  { %v303_v16 = vmax.f32 %v300_v14, 0.0 }
 0x26e   :  { %792 = vmatmul.mubr.f32.vlgmr.msra.gmra.mxu1 %v303_v16 }
 0x26f   :  { %861 = vmatprep.mubr.msk.f32.mxu1 %vm919_vm0, %v918_v0  ;;  %830 = vmatpush3.msra.mxu1 %v503_v20 }
 0x270   :  { %831 = vmatprep.subr.mxu1 %v918_v0 }
 0x271   :  { %832 = vmatpush3.msra.mxu1 %v502_v21 }
 0x272   :  { %833 = vmatprep.subr.mxu1 %v918_v0 }
 0x273   :  { %834 = vmatpush3.msra.mxu1 %v501_v22 }
 0x274   :  { %835 = vmatprep.subr.mxu1 %v918_v0 }
 0x275   :  { %836 = vmatpush3.msra.mxu1 %v500_v23 }
 0x276   :  { %837 = vmatprep.subr.mxu1 %v918_v0 }
 0x277   :  { %838 = vmatpush3.msra.mxu1 %v499_v24 }
 0x278   :  { %839 = vmatprep.subr.mxu1 %v918_v0 }
 0x279   :  { %840 = vmatpush3.msra.mxu1 %v498_v25 }
 0x27a   :  { %841 = vmatprep.subr.mxu1 %v918_v0 }
 0x27b   :  { %842 = vmatpush3.msra.mxu1 %v497_v26 }
 0x27c   :  { %843 = vmatprep.subr.mxu1 %v918_v0 }
 0x27d   :  { %844 = vmatpush3.msra.mxu1 %v496_v27 }
 0x27e   :  { %845 = vmatprep.subr.mxu1 %v918_v0 }
 0x27f   :  { %846 = vmatpush3.msra.mxu1 %v495_v28 }
 0x280   :  { %847 = vmatprep.subr.mxu1 %v918_v0 }
 0x281   :  { %848 = vmatpush3.msra.mxu1 %v494_v29 }
 0x282   :  { %849 = vmatprep.subr.mxu1 %v918_v0 }
 0x283   :  { %850 = vmatpush3.msra.mxu1 %v493_v30 }
 0x284   :  { %851 = vmatprep.subr.mxu1 %v918_v0 }
 0x285   :  { %852 = vmatpush3.msra.mxu1 %v492_v31 }
 0x286   :  { %853 = vmatprep.subr.mxu1 %v918_v0 }
 0x287   :  { %854 = vmatpush3.msra.mxu1 %v491_v32 }
 0x288   :  { %855 = vmatprep.subr.mxu1 %v918_v0 }
 0x289   :  { %856 = vmatpush3.msra.mxu1 %v490_v38 }
 0x28a   :  { %857 = vmatprep.subr.mxu1 %v918_v0 }
 0x28b   :  { %858 = vmatpush3.msra.mxu1 %v489_v39 }
 0x28c   :  { %859 = vmatprep.subr.mxu1 %v918_v0 }
 0x28d   :  { %860 = vmatpush3.msra.mxu1 %v488_v40 }
 0x32e   :  { %v391_v34 = vpop.f32.mrf.mxu1 }
 0x32f   :  { %v392_v35 = vadd.f32 %v591_v33, %v391_v34 }
 0x330   :  { %v793_v36 = vpop.f32.mrf.mxu1 }
 0x331   :  { %v395_v37 = vmax.f32 %v392_v35, 0.0 }
 0x333   :  { %827 = vmatmul.mubr.f32.vlgmr.msra.gmra.mxu0 %v395_v37 }
 0x3f3   :  { %v483_v42 = vpop.f32.mrf.mxu0 }
 0x3f4   :  { %v484_v43 = vadd.f32 %v592_v41, %v483_v42 }
 0x3f5   :  { %v828_v44 = vpop.f32.mrf.mxu0 }
 0x3f6   :  { %v487_v45 = vmax.f32 %v484_v43, 0.0 }
 0x3f8   :  { %862 = vmatmul.mubr.f32.vlgmr.msra.gmra.mxu1 %v487_v45 }
 0x4b8   :  { %v575_v47 = vpop.f32.mrf.mxu1 }
 0x4b9   :  { %v576_v48 = vadd.f32 %v593_v46, %v575_v47 }
 0x4ba   :  { %v863_v49 = vpop.f32.mrf.mxu1 }
 0x4bb   :  { %580 = vst.msk [vmem:[%s1040_s2] sm:$0xff] %vm579_vm2, %v576_v48 }
 0x4bc   :  { %585 = vsyncpa [#allocation3], 1 }
 0x4bd   :  { %586 = vsyncpa [#allocation5], 1 }

</bundles_post_ra>
